<compile_context>
chip_gen: v5e
topology: v5e:2x2
jax: 0.10.0
libtpu: 0.0.40
codegen_flags: <defaults>
</compile_context>

<pallas_src>
import jax
import jax.numpy as jnp
from jax.experimental import pallas as pl
from jax.experimental.pallas import tpu as pltpu

_LANE = 128
_SUBLANE = 16          # bf16 sublane tile
_EPS = 1e-5


def _round_up(n, m):
    return ((n + m - 1) // m) * m


def _mlp_kernel(x_ref,
                w1, t1, w2, t2, w3, t3, w4, t4, w5, t5, w6, t6,
                o_ref):
    """Fused 6-layer MLP; each layer is relu(h @ W + t) (BN pre-folded)."""

    def layer(h, w_ref, t_ref):
        z = jnp.dot(h.astype(w_ref.dtype), w_ref[...],
                    preferred_element_type=jnp.float32)
        return jnp.maximum(z + t_ref[...], 0.0)

    h = x_ref[...]            # (TB, input_dim) bf16
    h = layer(h, w1, t1)      # fc1 + bn1 + relu           (512)
    h = layer(h, w2, t2)      # fc2 + bn2 + relu           (256)   dropout = identity (eval)
    h = layer(h, w3, t3)      # fc3 + bn3 + relu           (128)
    h = layer(h, w4, t4)      # fc4 + bn4 + relu           (64 -> 128 lanes)
    h = layer(h, w5, t5)      # fc5 + bn5 + relu           (8  -> 128 lanes)
    h = layer(h, w6, t6)      # fc6 + relu                 (num_cls -> 128 lanes)
    o_ref[...] = h.astype(o_ref.dtype)


def _prepare_params(params, compute_dtype):
    """Fold BN into the linears, pad every output width to a lane multiple,
    pad the next layer's input rows to match, cast weights to bf16."""
    folded = []
    for i in range(1, 6):
        w, b, gamma, beta, mean, var = params[f"l{i}"]
        scale = gamma * jax.lax.rsqrt(var + _EPS)
        folded.append((w * scale[None, :], b * scale + (beta - mean * scale)))
    w6, b6 = params["l6"]
    folded.append((w6, b6))

    flat = []
    prev_out_pad = None
    for w_f, t_f in folded:
        if prev_out_pad is not None and prev_out_pad != w_f.shape[0]:
            w_f = jnp.pad(w_f, ((0, prev_out_pad - w_f.shape[0]), (0, 0)))
        out_pad = _round_up(max(w_f.shape[1], 1), _LANE)
        if out_pad != w_f.shape[1]:
            w_f = jnp.pad(w_f, ((0, 0), (0, out_pad - w_f.shape[1])))
            t_f = jnp.pad(t_f, (0, out_pad - t_f.shape[0]))
        flat += [w_f.astype(compute_dtype), t_f[None, :].astype(jnp.float32)]
        prev_out_pad = out_pad
    return flat, prev_out_pad   # prev_out_pad == padded fc6 width


def _choose_tiling(B, tb):
    """Balanced batch tiles, multiples of 16 sublanes; >=2 tiles for big B so
    both v7x TensorCores get work."""
    n_tiles = max(pl.cdiv(B, tb), 1)
    if B >= 64 and n_tiles < 2:
        n_tiles = 2
    tb_eff = _round_up(pl.cdiv(B, n_tiles), _SUBLANE)
    n_tiles = pl.cdiv(B, tb_eff)
    b_pad = n_tiles * tb_eff
    return tb_eff, b_pad, n_tiles


def mlp_forward(x, params, num_cls, *, tb=2048, compute_dtype=jnp.bfloat16):
    """x: (B, 1, input_dim) float32  ->  (B, num_cls) float32."""
    # Squeezing the singleton dim before fc1 == squeezing after (PyTorch order).
    # Cast to bf16 on the host: the kernel rounded x to bf16 at the fc1 dot
    # anyway, so numerics are identical and the HBM read is halved.
    x2d = x.reshape(x.shape[0], x.shape[-1]).astype(compute_dtype)
    B, d_in = x2d.shape

    flat, n_out = _prepare_params(params, compute_dtype)

    tb_eff, b_pad, n_tiles = _choose_tiling(B, tb)
    if b_pad != B:
        x2d = jnp.pad(x2d, ((0, b_pad - B), (0, 0)))
    grid = (n_tiles,)

    in_specs = [pl.BlockSpec((tb_eff, d_in), lambda i: (i, 0))]
    # Weights/shifts: full-array blocks whose block index never changes, so
    # they are DMA'd into VMEM once and stay resident across the batch loop.
    in_specs += [pl.BlockSpec(tuple(a.shape), lambda i: (0, 0)) for a in flat]
    out_spec = pl.BlockSpec((tb_eff, n_out), lambda i: (i, 0))

    out = pl.pallas_call(
        _mlp_kernel,
        out_shape=jax.ShapeDtypeStruct((b_pad, n_out), jnp.float32),
        grid=grid,
        in_specs=in_specs,
        out_specs=out_spec,
        compiler_params=pltpu.CompilerParams(
            dimension_semantics=("parallel",),
            vmem_limit_bytes=48 * 1024 * 1024),
    )(x2d, *flat)

    return out[:B, :num_cls]


def init_params(key, input_dim, num_cls):
    """Deterministic init matching the PyTorch module's parameter shapes.
    Linear weights are stored as (in, out) for the kernel layout."""
    dims = [input_dim, 512, 256, 128, 64, 8, num_cls]
    params = {}
    keys = jax.random.split(key, 32)
    k_idx = 0
    for i in range(1, 7):
        fan_in, fan_out = dims[i - 1], dims[i]
        bound = 1.0 / (fan_in ** 0.5)
        w = jax.random.uniform(keys[k_idx], (fan_in, fan_out), jnp.float32,
                               -bound, bound); k_idx += 1
        b = jax.random.uniform(keys[k_idx], (fan_out,), jnp.float32,
                               -bound, bound); k_idx += 1
        if i < 6:
            gamma = 1.0 + 0.05 * jax.random.normal(keys[k_idx], (fan_out,), jnp.float32); k_idx += 1
            beta = 0.05 * jax.random.normal(keys[k_idx], (fan_out,), jnp.float32); k_idx += 1
            mean = 0.1 * jax.random.normal(keys[k_idx], (fan_out,), jnp.float32); k_idx += 1
            var = jnp.abs(1.0 + 0.1 * jax.random.normal(keys[k_idx], (fan_out,), jnp.float32)); k_idx += 1
            params[f"l{i}"] = (w, b, gamma, beta, mean, var)
        else:
            params[f"l{i}"] = (w, b)
    return params


def reference_forward_matched(x, params, num_cls, compute_dtype=jnp.bfloat16):
    """Pure-JAX reference with the same BN-fold + bf16-at-dot precision as the kernel."""
    h = x.reshape(x.shape[0], x.shape[-1]).astype(jnp.float32)
    for i in range(1, 6):
        w, b, gamma, beta, mean, var = params[f"l{i}"]
        scale = gamma * jax.lax.rsqrt(var + _EPS)
        w_f = (w * scale[None, :]).astype(compute_dtype)
        t_f = b * scale + (beta - mean * scale)
        z = jnp.dot(h.astype(compute_dtype), w_f,
                    preferred_element_type=jnp.float32) + t_f
        h = jnp.maximum(z, 0.0)
    w6, b6 = params["l6"]
    z = jnp.dot(h.astype(compute_dtype), w6.astype(compute_dtype),
                preferred_element_type=jnp.float32) + b6
    return jnp.maximum(z, 0.0)


def reference_forward_f32(x, params, num_cls):
    """Pure-JAX f32 reference (exact original-module math)."""
    h = x.reshape(x.shape[0], x.shape[-1]).astype(jnp.float32)
    for i in range(1, 6):
        w, b, gamma, beta, mean, var = params[f"l{i}"]
        z = h @ w + b
        z = (z - mean) / jnp.sqrt(var + _EPS) * gamma + beta
        h = jnp.maximum(z, 0.0)
    w6, b6 = params["l6"]
    return jnp.maximum(h @ w6 + b6, 0.0)


if __name__ == "__main__":
    B, input_dim, num_cls = 8, 32, 10
    key = jax.random.PRNGKey(0)
    k_x, k_p = jax.random.split(key)
    x = jax.random.normal(k_x, (B, 1, input_dim), jnp.float32)
    params = init_params(k_p, input_dim, num_cls)

    out = mlp_forward(x, params, num_cls)
    out = jax.block_until_ready(out)
    assert out.shape == (B, num_cls)

    # Tight check against a reference with identical (bf16-at-dot) precision.
    ref = reference_forward_matched(x, params, num_cls)
    assert jnp.allclose(out, ref, atol=5e-3, rtol=5e-3), "mismatch vs matched-precision reference"

    # Loose check against the exact f32 original-module math (bf16 drift expected).
    ref32 = reference_forward_f32(x, params, num_cls)
    assert jnp.allclose(out, ref32, atol=1e-1, rtol=1e-1), "mismatch vs f32 reference"

    # Exercise a multi-tile / balanced-tile path as well (B not a tile multiple).
    B2 = 100
    x2 = jax.random.normal(jax.random.PRNGKey(1), (B2, 1, input_dim), jnp.float32)
    out2 = jax.block_until_ready(mlp_forward(x2, params, num_cls, tb=64))
    ref2 = reference_forward_matched(x2, params, num_cls)
    assert out2.shape == (B2, num_cls)
    assert jnp.allclose(out2, ref2, atol=5e-3, rtol=5e-3), "mismatch on multi-tile path"

    print("KERNEL_OK")
</pallas_src>

<mosaic_0001>
module attributes {stable_mosaic.version = 11 : i64} {
  func.func @_mlp_kernel(%arg0: i32, %arg1: memref<16x32xbf16, #tpu.memory_space<vmem>>, %arg2: memref<32x512xbf16, #tpu.memory_space<vmem>>, %arg3: memref<1x512xf32, #tpu.memory_space<vmem>>, %arg4: memref<512x256xbf16, #tpu.memory_space<vmem>>, %arg5: memref<1x256xf32, #tpu.memory_space<vmem>>, %arg6: memref<256x128xbf16, #tpu.memory_space<vmem>>, %arg7: memref<1x128xf32, #tpu.memory_space<vmem>>, %arg8: memref<128x128xbf16, #tpu.memory_space<vmem>>, %arg9: memref<1x128xf32, #tpu.memory_space<vmem>>, %arg10: memref<128x128xbf16, #tpu.memory_space<vmem>>, %arg11: memref<1x128xf32, #tpu.memory_space<vmem>>, %arg12: memref<128x128xbf16, #tpu.memory_space<vmem>>, %arg13: memref<1x128xf32, #tpu.memory_space<vmem>>, %arg14: memref<16x128xf32, #tpu.memory_space<vmem>>) attributes {dimension_semantics = [#tpu.dimension_semantics<parallel>], iteration_bounds = array<i64: 1>, scalar_prefetch = 0 : i64, scratch_operands = 0 : i64, tpu.core_type = #tpu.core_type<tc>, window_params = [{transform_indices = @transform_0, window_bounds = array<i64: 16, 32>}, {pipeline_mode = #tpu.pipeline_mode<synchronous>, transform_indices = @transform_1, window_bounds = array<i64: 32, 512>}, {pipeline_mode = #tpu.pipeline_mode<synchronous>, transform_indices = @transform_2, window_bounds = array<i64: 1, 512>}, {pipeline_mode = #tpu.pipeline_mode<synchronous>, transform_indices = @transform_3, window_bounds = array<i64: 512, 256>}, {pipeline_mode = #tpu.pipeline_mode<synchronous>, transform_indices = @transform_4, window_bounds = array<i64: 1, 256>}, {pipeline_mode = #tpu.pipeline_mode<synchronous>, transform_indices = @transform_5, window_bounds = array<i64: 256, 128>}, {pipeline_mode = #tpu.pipeline_mode<synchronous>, transform_indices = @transform_6, window_bounds = array<i64: 1, 128>}, {pipeline_mode = #tpu.pipeline_mode<synchronous>, transform_indices = @transform_7, window_bounds = array<i64: 128, 128>}, {pipeline_mode = #tpu.pipeline_mode<synchronous>, transform_indices = @transform_8, window_bounds = array<i64: 1, 128>}, {pipeline_mode = #tpu.pipeline_mode<synchronous>, transform_indices = @transform_9, window_bounds = array<i64: 128, 128>}, {pipeline_mode = #tpu.pipeline_mode<synchronous>, transform_indices = @transform_10, window_bounds = array<i64: 1, 128>}, {pipeline_mode = #tpu.pipeline_mode<synchronous>, transform_indices = @transform_11, window_bounds = array<i64: 128, 128>}, {pipeline_mode = #tpu.pipeline_mode<synchronous>, transform_indices = @transform_12, window_bounds = array<i64: 1, 128>}, {transform_indices = @transform_13, window_bounds = array<i64: 16, 128>}]} {
    %c0 = arith.constant 0 : index
    %c0_0 = arith.constant 0 : index
    %0 = vector.load %arg1[%c0, %c0_0] : memref<16x32xbf16, #tpu.memory_space<vmem>>, vector<16x32xbf16>
    %c0_1 = arith.constant 0 : index
    %c0_2 = arith.constant 0 : index
    %1 = vector.load %arg2[%c0_1, %c0_2] : memref<32x512xbf16, #tpu.memory_space<vmem>>, vector<32x512xbf16>
    %cst = arith.constant dense<0.000000e+00> : vector<16x512xf32>
    %2 = tpu.matmul %0, %1, %cst {dimension_numbers = #tpu.dot_dimension_numbers<[1], [0], [0], [1], [0, 0, 1, 1], [], []>} : vector<16x32xbf16>, vector<32x512xbf16>, vector<16x512xf32> -> vector<16x512xf32>
    %c0_3 = arith.constant 0 : index
    %c0_4 = arith.constant 0 : index
    %3 = vector.load %arg3[%c0_3, %c0_4] : memref<1x512xf32, #tpu.memory_space<vmem>>, vector<1x512xf32>
    %4 = vector.broadcast %3 : vector<1x512xf32> to vector<16x512xf32>
    %5 = arith.addf %2, %4 : vector<16x512xf32>
    %cst_5 = arith.constant 0.000000e+00 : f32
    %6 = vector.broadcast %cst_5 : f32 to vector<16x512xf32>
    %7 = arith.maximumf %5, %6 : vector<16x512xf32>
    %8 = arith.truncf %7 : vector<16x512xf32> to vector<16x512xbf16>
    %c0_6 = arith.constant 0 : index
    %c0_7 = arith.constant 0 : index
    %9 = vector.load %arg4[%c0_6, %c0_7] : memref<512x256xbf16, #tpu.memory_space<vmem>>, vector<512x256xbf16>
    %cst_8 = arith.constant dense<0.000000e+00> : vector<16x256xf32>
    %10 = tpu.matmul %8, %9, %cst_8 {dimension_numbers = #tpu.dot_dimension_numbers<[1], [0], [0], [1], [0, 0, 1, 1], [], []>} : vector<16x512xbf16>, vector<512x256xbf16>, vector<16x256xf32> -> vector<16x256xf32>
    %c0_9 = arith.constant 0 : index
    %c0_10 = arith.constant 0 : index
    %11 = vector.load %arg5[%c0_9, %c0_10] : memref<1x256xf32, #tpu.memory_space<vmem>>, vector<1x256xf32>
    %12 = vector.broadcast %11 : vector<1x256xf32> to vector<16x256xf32>
    %13 = arith.addf %10, %12 : vector<16x256xf32>
    %cst_11 = arith.constant 0.000000e+00 : f32
    %14 = vector.broadcast %cst_11 : f32 to vector<16x256xf32>
    %15 = arith.maximumf %13, %14 : vector<16x256xf32>
    %16 = arith.truncf %15 : vector<16x256xf32> to vector<16x256xbf16>
    %c0_12 = arith.constant 0 : index
    %c0_13 = arith.constant 0 : index
    %17 = vector.load %arg6[%c0_12, %c0_13] : memref<256x128xbf16, #tpu.memory_space<vmem>>, vector<256x128xbf16>
    %cst_14 = arith.constant dense<0.000000e+00> : vector<16x128xf32>
    %18 = tpu.matmul %16, %17, %cst_14 {dimension_numbers = #tpu.dot_dimension_numbers<[1], [0], [0], [1], [0, 0, 1, 1], [], []>} : vector<16x256xbf16>, vector<256x128xbf16>, vector<16x128xf32> -> vector<16x128xf32>
    %c0_15 = arith.constant 0 : index
    %c0_16 = arith.constant 0 : index
    %19 = vector.load %arg7[%c0_15, %c0_16] : memref<1x128xf32, #tpu.memory_space<vmem>>, vector<1x128xf32>
    %20 = vector.broadcast %19 : vector<1x128xf32> to vector<16x128xf32>
    %21 = arith.addf %18, %20 : vector<16x128xf32>
    %cst_17 = arith.constant 0.000000e+00 : f32
    %22 = vector.broadcast %cst_17 : f32 to vector<16x128xf32>
    %23 = arith.maximumf %21, %22 : vector<16x128xf32>
    %24 = arith.truncf %23 : vector<16x128xf32> to vector<16x128xbf16>
    %c0_18 = arith.constant 0 : index
    %c0_19 = arith.constant 0 : index
    %25 = vector.load %arg8[%c0_18, %c0_19] : memref<128x128xbf16, #tpu.memory_space<vmem>>, vector<128x128xbf16>
    %cst_20 = arith.constant dense<0.000000e+00> : vector<16x128xf32>
    %26 = tpu.matmul %24, %25, %cst_20 {dimension_numbers = #tpu.dot_dimension_numbers<[1], [0], [0], [1], [0, 0, 1, 1], [], []>} : vector<16x128xbf16>, vector<128x128xbf16>, vector<16x128xf32> -> vector<16x128xf32>
    %c0_21 = arith.constant 0 : index
    %c0_22 = arith.constant 0 : index
    %27 = vector.load %arg9[%c0_21, %c0_22] : memref<1x128xf32, #tpu.memory_space<vmem>>, vector<1x128xf32>
    %28 = vector.broadcast %27 : vector<1x128xf32> to vector<16x128xf32>
    %29 = arith.addf %26, %28 : vector<16x128xf32>
    %cst_23 = arith.constant 0.000000e+00 : f32
    %30 = vector.broadcast %cst_23 : f32 to vector<16x128xf32>
    %31 = arith.maximumf %29, %30 : vector<16x128xf32>
    %32 = arith.truncf %31 : vector<16x128xf32> to vector<16x128xbf16>
    %c0_24 = arith.constant 0 : index
    %c0_25 = arith.constant 0 : index
    %33 = vector.load %arg10[%c0_24, %c0_25] : memref<128x128xbf16, #tpu.memory_space<vmem>>, vector<128x128xbf16>
    %cst_26 = arith.constant dense<0.000000e+00> : vector<16x128xf32>
    %34 = tpu.matmul %32, %33, %cst_26 {dimension_numbers = #tpu.dot_dimension_numbers<[1], [0], [0], [1], [0, 0, 1, 1], [], []>} : vector<16x128xbf16>, vector<128x128xbf16>, vector<16x128xf32> -> vector<16x128xf32>
    %c0_27 = arith.constant 0 : index
    %c0_28 = arith.constant 0 : index
    %35 = vector.load %arg11[%c0_27, %c0_28] : memref<1x128xf32, #tpu.memory_space<vmem>>, vector<1x128xf32>
    %36 = vector.broadcast %35 : vector<1x128xf32> to vector<16x128xf32>
    %37 = arith.addf %34, %36 : vector<16x128xf32>
    %cst_29 = arith.constant 0.000000e+00 : f32
    %38 = vector.broadcast %cst_29 : f32 to vector<16x128xf32>
    %39 = arith.maximumf %37, %38 : vector<16x128xf32>
    %40 = arith.truncf %39 : vector<16x128xf32> to vector<16x128xbf16>
    %c0_30 = arith.constant 0 : index
    %c0_31 = arith.constant 0 : index
    %41 = vector.load %arg12[%c0_30, %c0_31] : memref<128x128xbf16, #tpu.memory_space<vmem>>, vector<128x128xbf16>
    %cst_32 = arith.constant dense<0.000000e+00> : vector<16x128xf32>
    %42 = tpu.matmul %40, %41, %cst_32 {dimension_numbers = #tpu.dot_dimension_numbers<[1], [0], [0], [1], [0, 0, 1, 1], [], []>} : vector<16x128xbf16>, vector<128x128xbf16>, vector<16x128xf32> -> vector<16x128xf32>
    %c0_33 = arith.constant 0 : index
    %c0_34 = arith.constant 0 : index
    %43 = vector.load %arg13[%c0_33, %c0_34] : memref<1x128xf32, #tpu.memory_space<vmem>>, vector<1x128xf32>
    %44 = vector.broadcast %43 : vector<1x128xf32> to vector<16x128xf32>
    %45 = arith.addf %42, %44 : vector<16x128xf32>
    %cst_35 = arith.constant 0.000000e+00 : f32
    %46 = vector.broadcast %cst_35 : f32 to vector<16x128xf32>
    %47 = arith.maximumf %45, %46 : vector<16x128xf32>
    %c0_36 = arith.constant 0 : index
    %c0_37 = arith.constant 0 : index
    %48 = vector.load %arg14[%c0_36, %c0_37] : memref<16x128xf32, #tpu.memory_space<vmem>>, vector<16x128xf32>
    tpu.vector_store %arg14[%c0_36, %c0_37], %47 {strides = array<i32>} : memref<16x128xf32, #tpu.memory_space<vmem>>, vector<16x128xf32>,
    return
  }
  func.func @transform_0(%arg0: i32) -> (i32, i32) {
    %c0_i32 = arith.constant 0 : i32
    %c0_i32_0 = arith.constant 0 : i32
    return %arg0, %c0_i32 : i32, i32
  }
  func.func @transform_1(%arg0: i32) -> (i32, i32) {
    %c0_i32 = arith.constant 0 : i32
    %c0_i32_0 = arith.constant 0 : i32
    %c0_i32_1 = arith.constant 0 : i32
    return %c0_i32, %c0_i32_0 : i32, i32
  }
  func.func @transform_2(%arg0: i32) -> (i32, i32) {
    %c0_i32 = arith.constant 0 : i32
    %c0_i32_0 = arith.constant 0 : i32
    %c0_i32_1 = arith.constant 0 : i32
    return %c0_i32, %c0_i32_0 : i32, i32
  }
  func.func @transform_3(%arg0: i32) -> (i32, i32) {
    %c0_i32 = arith.constant 0 : i32
    %c0_i32_0 = arith.constant 0 : i32
    %c0_i32_1 = arith.constant 0 : i32
    return %c0_i32, %c0_i32_0 : i32, i32
  }
  func.func @transform_4(%arg0: i32) -> (i32, i32) {
    %c0_i32 = arith.constant 0 : i32
    %c0_i32_0 = arith.constant 0 : i32
    %c0_i32_1 = arith.constant 0 : i32
    return %c0_i32, %c0_i32_0 : i32, i32
  }
  func.func @transform_5(%arg0: i32) -> (i32, i32) {
    %c0_i32 = arith.constant 0 : i32
    %c0_i32_0 = arith.constant 0 : i32
    %c0_i32_1 = arith.constant 0 : i32
    return %c0_i32, %c0_i32_0 : i32, i32
  }
  func.func @transform_6(%arg0: i32) -> (i32, i32) {
    %c0_i32 = arith.constant 0 : i32
    %c0_i32_0 = arith.constant 0 : i32
    %c0_i32_1 = arith.constant 0 : i32
    return %c0_i32, %c0_i32_0 : i32, i32
  }
  func.func @transform_7(%arg0: i32) -> (i32, i32) {
    %c0_i32 = arith.constant 0 : i32
    %c0_i32_0 = arith.constant 0 : i32
    %c0_i32_1 = arith.constant 0 : i32
    return %c0_i32, %c0_i32_0 : i32, i32
  }
  func.func @transform_8(%arg0: i32) -> (i32, i32) {
    %c0_i32 = arith.constant 0 : i32
    %c0_i32_0 = arith.constant 0 : i32
    %c0_i32_1 = arith.constant 0 : i32
    return %c0_i32, %c0_i32_0 : i32, i32
  }
  func.func @transform_9(%arg0: i32) -> (i32, i32) {
    %c0_i32 = arith.constant 0 : i32
    %c0_i32_0 = arith.constant 0 : i32
    %c0_i32_1 = arith.constant 0 : i32
    return %c0_i32, %c0_i32_0 : i32, i32
  }
  func.func @transform_10(%arg0: i32) -> (i32, i32) {
    %c0_i32 = arith.constant 0 : i32
    %c0_i32_0 = arith.constant 0 : i32
    %c0_i32_1 = arith.constant 0 : i32
    return %c0_i32, %c0_i32_0 : i32, i32
  }
  func.func @transform_11(%arg0: i32) -> (i32, i32) {
    %c0_i32 = arith.constant 0 : i32
    %c0_i32_0 = arith.constant 0 : i32
    %c0_i32_1 = arith.constant 0 : i32
    return %c0_i32, %c0_i32_0 : i32, i32
  }
  func.func @transform_12(%arg0: i32) -> (i32, i32) {
    %c0_i32 = arith.constant 0 : i32
    %c0_i32_0 = arith.constant 0 : i32
    %c0_i32_1 = arith.constant 0 : i32
    return %c0_i32, %c0_i32_0 : i32, i32
  }
  func.func @transform_13(%arg0: i32) -> (i32, i32) {
    %c0_i32 = arith.constant 0 : i32
    %c0_i32_0 = arith.constant 0 : i32
    return %arg0, %c0_i32 : i32, i32
  }
}

</mosaic_0001>

<bundles_post_ra>
// kernel: tpu_custom_call.1
= control target key start
LH: loop header
LB: loop body
LE: loop exit
PB: predicated region body
PF: predicated region fallthrough
CT: control target
= control target key end

     0   :  { %18 = vsyncpa [#allocation3], 0  ;;  %s2230_s0 = inlined_call_operand.hbm [shape: bf16[16,32], index: 0, kind: input, shape index: {}]   ;;  %s2231_s1 = inlined_call_operand.hbm [shape: bf16[32,512], index: 1, kind: input, shape index: {}]   ;;  %s2232_s2 = inlined_call_operand.hbm [shape: f32[1,512], index: 2, kind: input, shape index: {}]   ;;  %s2233_s3 = inlined_call_operand.hbm [shape: bf16[512,256], index: 3, kind: input, shape index: {}]   ;;  %s2234_s4 = inlined_call_operand.vmem [shape: f32[1,256], index: 4, kind: input, shape index: {}]   ;;  %s2235_s5 = inlined_call_operand.hbm [shape: bf16[256,128], index: 5, kind: input, shape index: {}]   ;;  %s2236_s6 = inlined_call_operand.vmem [shape: f32[1,128], index: 6, kind: input, shape index: {}]   ;;  %s2237_s7 = inlined_call_operand.hbm [shape: bf16[128,128], index: 7, kind: input, shape index: {}]   ;;  %s2238_s8 = inlined_call_operand.vmem [shape: f32[1,128], index: 8, kind: input, shape index: {}]   ;;  %s2239_s9 = inlined_call_operand.hbm [shape: bf16[128,128], index: 9, kind: input, shape index: {}]   ;;  %s2240_s10 = inlined_call_operand.vmem [shape: f32[1,128], index: 10, kind: input, shape index: {}]   ;;  %s2241_s11 = inlined_call_operand.hbm [shape: bf16[128,128], index: 11, kind: input, shape index: {}]   ;;  %s2242_s12 = inlined_call_operand.vmem [shape: f32[1,128], index: 12, kind: input, shape index: {}]   ;;  %s2243_s13 = inlined_call_operand.hbm [shape: f32[16,128], index: 13, kind: output, shape index: {}]  }
   0x1   :  { %19 = vsyncpa [#allocation6], 0 }
   0x2   :  { %20 = vsyncpa [#allocation9], 0 }
   0x3   :  { %21 = vsyncpa [#allocation12], 0 }
   0x4   :  { %22 = vsyncpa [#allocation15], 0  ;;  %s41_s27 = sshll.u32 %s2231_s1, 4  ;;  %s42_s27 = int_to_ptr.hbm [resolvable:$true] %s41_s27 }
   0x5   :  { %23 = vsyncpa [#allocation4], 0  ;;  %s2072_s28 = smov [#allocation5]   ;;  %s65_s15 = sshll.u32 %s2233_s3, 4  ;;  %s66_s15 = int_to_ptr.hbm [resolvable:$true] %s65_s15 }
   0x6   :  { %s43_s29 = sshll.u32 %s2072_s28, 4  ;;  %s2073_s16 = smov 256   ;;  %s44_s29 = int_to_ptr.vmem [resolvable:$true] %s43_s29 }
   0x7   :  { %s2074_s17 = smov 16   ;;  %s2075_s18 = smov [#allocation8]  }
   0x8   :  { %49 = dma.hbm_to_vmem [thread:$0]  %s42_s27, 1024, %s44_s29, [#allocation6], %s2073_s16, %s2073_s16, %s2074_s17  }
   0x9   :  { %s67_s19 = sshll.u32 %s2075_s18, 4  ;;  %s2076_s20 = smov 128   ;;  %s68_s19 = int_to_ptr.vmem [resolvable:$true] %s67_s19 }
   0xa   :  { %s2077_s21 = smov 8   ;;  %s95_s23 = sshll.u32 %s2237_s7, 4  ;;  %s96_s23 = int_to_ptr.hbm [resolvable:$true] %s95_s23 }
   0xb   :  { %73 = dma.hbm_to_vmem [thread:$0]  %s66_s15, 8192, %s68_s19, [#allocation9], %s2076_s20, %s2076_s20, %s2077_s21  }
   0xc   :  { %s2078_s24 = smov [#allocation11]   ;;  %s28_s27 = sshll.u32 %s2230_s0, 4  ;;  %s29_s27 = int_to_ptr.hbm [resolvable:$true] %s28_s27 }
   0xd   :  { %s97_s3 = sshll.u32 %s2078_s24, 4  ;;  %s2079_s28 = smov 64   ;;  %s98_s3 = int_to_ptr.vmem [resolvable:$true] %s97_s3 }
   0xe   :  { %s2080_s29 = smov 4   ;;  %s2081_s30 = smov [#allocation2]  }
   0xf   :  { %103 = dma.hbm_to_vmem [thread:$0]  %s96_s23, 1024, %s98_s3, [#allocation12], %s2079_s28, %s2079_s28, %s2080_s29  }
  0x10   :  { %s30_s14 = sshll.u32 %s2081_s30, 4  ;;  %s55_s7 = sshll.u32 %s2232_s2, 4  ;;  %s31_s14 = int_to_ptr.vmem [resolvable:$true] %s30_s14  ;;  %s56_s7 = int_to_ptr.hbm [resolvable:$true] %s55_s7 }
  0x11   :  { %36 = dma.hbm_to_vmem [thread:$0]  %s29_s27, 128, %s31_s14, [#allocation3], %s2079_s28, %s2079_s28, %s2080_s29  }
  0x12   :  { %s80_s18 = sshll.u32 %s2235_s5, 4  ;;  %s2082_s19 = smov [#allocation7]   ;;  %s81_s18 = int_to_ptr.hbm [resolvable:$true] %s80_s18 }
  0x13   :  { %s57_s1 = sshll.u32 %s2082_s19, 4  ;;  %s2083_s22 = smov [#allocation10]   ;;  %s58_s1 = int_to_ptr.vmem [resolvable:$true] %s57_s1 }
  0x14   :  { %60 = dma.hbm_to_vmem [thread:$0]  %s56_s7, 64, %s58_s1, [#allocation6]  }
  0x15   :  { %s82_s23 = sshll.u32 %s2083_s22, 4  ;;  %s110_s2 = sshll.u32 %s2239_s9, 4  ;;  %s83_s23 = int_to_ptr.vmem [resolvable:$true] %s82_s23  ;;  %s111_s2 = int_to_ptr.hbm [resolvable:$true] %s110_s2 }
  0x16   :  { %88 = dma.hbm_to_vmem [thread:$0]  %s81_s18, 2048, %s83_s23, [#allocation9], %s2079_s28, %s2079_s28, %s2080_s29  }
  0x17   :  { %s125_s5 = sshll.u32 %s2241_s11, 4  ;;  %s2084_s27 = smov [#allocation13]   ;;  %s126_s5 = int_to_ptr.hbm [resolvable:$true] %s125_s5 }
  0x18   :  { %s112_s30 = sshll.u32 %s2084_s27, 4  ;;  %s2085_s14 = smov [#allocation14]   ;;  %s113_s30 = int_to_ptr.vmem [resolvable:$true] %s112_s30 }
  0x19   :  { %118 = dma.hbm_to_vmem [thread:$0]  %s111_s2, 1024, %s113_s30, [#allocation12], %s2079_s28, %s2079_s28, %s2080_s29  }
  0x1a   :  { %s127_s9 = sshll.u32 %s2085_s14, 4  ;;  %s128_s9 = int_to_ptr.vmem [resolvable:$true] %s127_s9 }
  0x1b   :  { %133 = dma.hbm_to_vmem [thread:$0]  %s126_s5, 1024, %s128_s9, [#allocation15], %s2079_s28, %s2079_s28, %s2080_s29  }
  0x1c   :  { %2060 = dma.done.wait [#allocation3], 128  }
  0x1d   :  { %2061 = vsyncadd [#allocation3], 4294967168 }
  0x1e   :  { %2062 = dma.done.wait [#allocation6], 1088  }
  0x1f   :  { %2063 = vsyncadd [#allocation6], 4294966208 }
  0x20   :  { %2064 = dma.done.wait [#allocation9], 10240  }
  0x21   :  { %2065 = vsyncadd [#allocation9], 4294957056 }
  0x22   :  { %2066 = dma.done.wait [#allocation12], 2048  }
  0x23   :  { %2067 = vsyncadd [#allocation12], 4294965248 }
  0x24   :  { %2068 = dma.done.wait [#allocation15], 1024  }
  0x25   :  { %2069 = vsyncadd [#allocation15], 4294966272  ;;  %v1278_v0 = vld [vmem:[#allocation5 + $0x20] sm:$0xf]  ;;  %v1719_v1 = vld [vmem:[#allocation5 + $0x2c] sm:$0xf0] }
  0x26   :  { %v1286_v2 = vld [vmem:[#allocation5 + $0x28] sm:$0xf]  ;;  %v1279_v3 = vor.u32 %v1719_v1, %v1278_v0  ;;  %v1720_v4 = vld [vmem:[#allocation5 + $0x34] sm:$0xf0]  ;;  %v1718_v5 = vld [vmem:[#allocation5 + $0x2c] sm:$0xf] }
  0x27   :  { %v1288_v6 = vld [vmem:[#allocation5 + $0x38] sm:$0xf0]  ;;  %v1287_v7 = vor.u32 %v1720_v4, %v1286_v2  ;;  %v1262_v9 = vld [vmem:[#allocation5] sm:$0xf]  ;;  %v1715_v10 = vld [vmem:[#allocation5 + $0xc] sm:$0xf0] }
  0x28   :  { %v1291_v8 = vor.u32 %v1718_v5, %v1288_v6  ;;  %v1270_v11 = vld [vmem:[#allocation5 + $0x8] sm:$0xf]  ;;  %244 = vmatpush.bf16.msra.mxu1 %v1279_v3  ;;  %v1263_v12 = vor.u32 %v1715_v10, %v1262_v9  ;;  %v1716_v13 = vld [vmem:[#allocation5 + $0x14] sm:$0xf0]  ;;  %v1714_v14 = vld [vmem:[#allocation5 + $0xc] sm:$0xf] }
  0x29   :  { %v1272_v15 = vld [vmem:[#allocation5 + $0x18] sm:$0xf0]  ;;  %272 = vmatpush.bf16.msra.mxu2 %v1287_v7  ;;  %v1271_v16 = vor.u32 %v1716_v13, %v1270_v11  ;;  %vm234_vm0 = vcmask 261120   ;;  %v1717_v19 = vld [vmem:[#allocation5 + $0x24] sm:$0xf]  ;;  %s2086_s17 = smov [#allocation16]  }
  0x2a   :  { %286 = vmatpush.bf16.msra.mxu3 %v1291_v8  ;;  %v1275_v17 = vor.u32 %v1714_v14, %v1272_v15  ;;  %v2199_v18 = vld [vmem:[#allocation2] sm:$0xff]  ;;  %v1280_v20 = vld [vmem:[#allocation5 + $0x30] sm:$0xf0]  ;;  %v1713_v22 = vld [vmem:[#allocation5 + $0x4] sm:$0xf]  ;;  %s1237_s18 = sshll.u32 %s2086_s17, 4  ;;  %s1238_s18 = int_to_ptr.vmem [resolvable:$true] %s1237_s18 }
  0x2b   :  { %v1283_v21 = vor.u32 %v1717_v19, %v1280_v20  ;;  %v1264_v23 = vld [vmem:[#allocation5 + $0x10] sm:$0xf0]  ;;  %v1736_v25 = vld [vmem:[#allocation8 + $0x74] sm:$0xf0]  ;;  %v1346_v26 = vld [vmem:[#allocation8 + $0x60] sm:$0xf] }
  0x2c   :  { %v1354_v24 = vld [vmem:[#allocation8 + $0x70] sm:$0xf]  ;;  %v1734_v27 = vld [vmem:[#allocation8 + $0x64] sm:$0xf0]  ;;  %245 = vmatpush.bf16.msra.mxu1 %v1263_v12  ;;  %v1768_v30 = vld [vmem:[#allocation8 + $0x174] sm:$0xf0]  ;;  %v1267_v34 = vor.u32 %v1713_v22, %v1264_v23 }
  0x2d   :  { %v1355_v28 = vor.u32 %v1736_v25, %v1354_v24  ;;  %v1482_v29 = vld [vmem:[#allocation8 + $0x170] sm:$0xf]  ;;  %273 = vmatpush.bf16.msra.mxu2 %v1271_v16  ;;  %v1784_v33 = vld [vmem:[#allocation8 + $0x1f4] sm:$0xf0]  ;;  %v1347_v35 = vor.u32 %v1734_v27, %v1346_v26  ;;  %v1474_v37 = vld [vmem:[#allocation8 + $0x160] sm:$0xf] }
  0x2e   :  { %v1546_v31 = vld [vmem:[#allocation8 + $0x1f0] sm:$0xf]  ;;  %287 = vmatpush.bf16.msra.mxu3 %v1275_v17  ;;  %v1483_v32 = vor.u32 %v1768_v30, %v1482_v29  ;;  %v1766_v38 = vld [vmem:[#allocation8 + $0x164] sm:$0xf0]  ;;  %v1538_v39 = vld [vmem:[#allocation8 + $0x1e0] sm:$0xf] }
  0x2f   :  { %696 = vmatpush.bf16.msra.mxu0 %v1355_v28  ;;  %v1547_v36 = vor.u32 %v1784_v33, %v1546_v31  ;;  %1292 = vmatmul.msk.bf16.vlgmr.msra.gmra.mxu1 %vm234_vm0, %v2199_v18  ;;  %v1338_v40 = vld [vmem:[#allocation8 + $0x50] sm:$0xf]  ;;  %v1732_v41 = vld [vmem:[#allocation8 + $0x54] sm:$0xf0]  ;;  %v1475_v42 = vor.u32 %v1766_v38, %v1474_v37  ;;  %v1782_v43 = vld [vmem:[#allocation8 + $0x1e4] sm:$0xf0] }
  0x30   :  { %258 = vmatpush.bf16.msrb.mxu1 %v1283_v21  ;;  %1294 = vmatmul.msk.bf16.vlgmr.msra.gmra.mxu2 %vm234_vm0, %v2199_v18  ;;  %v1466_v44 = vld [vmem:[#allocation8 + $0x150] sm:$0xf]  ;;  %v1764_v45 = vld [vmem:[#allocation8 + $0x154] sm:$0xf0]  ;;  %v1539_v46 = vor.u32 %v1782_v43, %v1538_v39  ;;  %v1339_v48 = vor.u32 %v1732_v41, %v1338_v40  ;;  %v1330_v52 = vld [vmem:[#allocation8 + $0x40] sm:$0xf] }
  0x31   :  { %724 = vmatpush.bf16.msrb.mxu2 %v1483_v32  ;;  %1295 = vmatmul.msk.bf16.vlgmr.msra.gmra.mxu3 %vm234_vm0, %v2199_v18  ;;  %v1530_v47 = vld [vmem:[#allocation8 + $0x1d0] sm:$0xf]  ;;  %v1780_v49 = vld [vmem:[#allocation8 + $0x1d4] sm:$0xf0]  ;;  %v1730_v53 = vld [vmem:[#allocation8 + $0x44] sm:$0xf0]  ;;  %v1467_v54 = vor.u32 %v1764_v45, %v1466_v44 }
  0x32   :  { %738 = vmatpush.bf16.msrb.mxu3 %v1547_v36  ;;  %v1418_v50 = vld [vmem:[#allocation8 + $0xf0] sm:$0xf]  ;;  %v1752_v51 = vld [vmem:[#allocation8 + $0xf4] sm:$0xf0]  ;;  %v1458_v56 = vld [vmem:[#allocation8 + $0x140] sm:$0xf]  ;;  %v1531_v59 = vor.u32 %v1780_v49, %v1530_v47  ;;  %v1331_v61 = vor.u32 %v1730_v53, %v1330_v52 }
  0x33   :  { %697 = vmatpush.bf16.msra.mxu0 %v1347_v35  ;;  %v1419_v55 = vor.u32 %v1752_v51, %v1418_v50  ;;  %v1762_v57 = vld [vmem:[#allocation8 + $0x144] sm:$0xf0]  ;;  %v1410_v58 = vld [vmem:[#allocation8 + $0xe0] sm:$0xf]  ;;  %v1322_v62 = vld [vmem:[#allocation8 + $0x30] sm:$0xf] }
  0x34   :  { %259 = vmatpush.bf16.msrb.mxu1 %v1267_v34  ;;  %v1750_v60 = vld [vmem:[#allocation8 + $0xe4] sm:$0xf0]  ;;  %v1522_v63 = vld [vmem:[#allocation8 + $0x1c0] sm:$0xf]  ;;  %v1728_v2 = vld [vmem:[#allocation8 + $0x34] sm:$0xf0]  ;;  %v1459_v3 = vor.u32 %v1762_v57, %v1458_v56 }
  0x35   :  { %725 = vmatpush.bf16.msrb.mxu2 %v1475_v42  ;;  %v1778_v0 = vld [vmem:[#allocation8 + $0x1c4] sm:$0xf0]  ;;  %v1411_v1 = vor.u32 %v1750_v60, %v1410_v58  ;;  %v1402_v4 = vld [vmem:[#allocation8 + $0xd0] sm:$0xf]  ;;  %v1748_v5 = vld [vmem:[#allocation8 + $0xd4] sm:$0xf0]  ;;  %v1323_v13 = vor.u32 %v1728_v2, %v1322_v62 }
  0x36   :  { %739 = vmatpush.bf16.msrb.mxu3 %v1539_v46  ;;  %v1450_v6 = vld [vmem:[#allocation8 + $0x130] sm:$0xf]  ;;  %v1760_v7 = vld [vmem:[#allocation8 + $0x134] sm:$0xf0]  ;;  %v1523_v8 = vor.u32 %v1778_v0, %v1522_v63  ;;  %v1314_v9 = vld [vmem:[#allocation8 + $0x20] sm:$0xf]  ;;  %v1403_v12 = vor.u32 %v1748_v5, %v1402_v4 }
  0x37   :  { %698 = vmatpush.bf16.msra.mxu0 %v1339_v48  ;;  %v1726_v10 = vld [vmem:[#allocation8 + $0x24] sm:$0xf0]  ;;  %v1514_v11 = vld [vmem:[#allocation8 + $0x1b0] sm:$0xf]  ;;  %v1776_v14 = vld [vmem:[#allocation8 + $0x1b4] sm:$0xf0]  ;;  %v1451_v17 = vor.u32 %v1760_v7, %v1450_v6 }
  0x38   :  { %710 = vmatpush.bf16.msra.mxu1 %v1419_v55  ;;  %v1394_v15 = vld [vmem:[#allocation8 + $0xc0] sm:$0xf]  ;;  %v1746_v16 = vld [vmem:[#allocation8 + $0xc4] sm:$0xf0]  ;;  %v1515_v21 = vor.u32 %v1776_v14, %v1514_v11  ;;  %v1315_v23 = vor.u32 %v1726_v10, %v1314_v9  ;;  %v1306_v26 = vld [vmem:[#allocation8 + $0x10] sm:$0xf] }
  0x39   :  { %726 = vmatpush.bf16.msrb.mxu2 %v1467_v54  ;;  %v1442_v19 = vld [vmem:[#allocation8 + $0x120] sm:$0xf]  ;;  %v1758_v20 = vld [vmem:[#allocation8 + $0x124] sm:$0xf0]  ;;  %v1395_v22 = vor.u32 %v1746_v16, %v1394_v15  ;;  %v1724_v27 = vld [vmem:[#allocation8 + $0x14] sm:$0xf0] }
  0x3a   :  { %740 = vmatpush.bf16.msrb.mxu3 %v1531_v59  ;;  %v1506_v24 = vld [vmem:[#allocation8 + $0x1a0] sm:$0xf]  ;;  %v1774_v25 = vld [vmem:[#allocation8 + $0x1a4] sm:$0xf0]  ;;  %v1443_v28 = vor.u32 %v1758_v20, %v1442_v19  ;;  %v1307_v30 = vor.u32 %v1724_v27, %v1306_v26  ;;  %v1735_v34 = vld [vmem:[#allocation8 + $0x74] sm:$0xf] }
  0x3b   :  { %699 = vmatpush.bf16.msra.mxu0 %v1331_v61  ;;  %v1507_v29 = vor.u32 %v1774_v25, %v1506_v24  ;;  %v1298_v31 = vld [vmem:[#allocation8] sm:$0xf]  ;;  %v1722_v32 = vld [vmem:[#allocation8 + $0x4] sm:$0xf0]  ;;  %v1356_v35 = vld [vmem:[#allocation8 + $0x78] sm:$0xf0] }
  0x3c   :  { %711 = vmatpush.bf16.msra.mxu1 %v1411_v1  ;;  %v1299_v33 = vor.u32 %v1722_v32, %v1298_v31  ;;  %v1359_v36 = vor.u32 %v1735_v34, %v1356_v35  ;;  %v1756_v37 = vld [vmem:[#allocation8 + $0x114] sm:$0xf0]  ;;  %v1498_v38 = vld [vmem:[#allocation8 + $0x190] sm:$0xf]  ;;  %v1733_v45 = vld [vmem:[#allocation8 + $0x64] sm:$0xf] }
  0x3d   :  { %727 = vmatpush.bf16.msrb.mxu2 %v1459_v3  ;;  %v1772_v40 = vld [vmem:[#allocation8 + $0x194] sm:$0xf0]  ;;  %v1386_v42 = vld [vmem:[#allocation8 + $0xb0] sm:$0xf]  ;;  %v1348_v46 = vld [vmem:[#allocation8 + $0x68] sm:$0xf0] }
  0x3e   :  { %741 = vmatpush.bf16.msrb.mxu3 %v1523_v8  ;;  %v1499_v41 = vor.u32 %v1772_v40, %v1498_v38  ;;  %v1744_v43 = vld [vmem:[#allocation8 + $0xb4] sm:$0xf0]  ;;  %v1351_v47 = vor.u32 %v1733_v45, %v1348_v46  ;;  %v1426_v48 = vld [vmem:[#allocation8 + $0x100] sm:$0xf]  ;;  %v1754_v49 = vld [vmem:[#allocation8 + $0x104] sm:$0xf0] }
  0x3f   :  { %700 = vmatpush.bf16.msra.mxu0 %v1323_v13  ;;  %1293 = vmatmul.msk.bf16.vlgmr.msrb.gmra.mxu1 %vm234_vm0, %v2199_v18  ;;  %v1434_v18 = vld [vmem:[#allocation8 + $0x110] sm:$0xf]  ;;  %v1387_v44 = vor.u32 %v1744_v43, %v1386_v42  ;;  %v1490_v50 = vld [vmem:[#allocation8 + $0x180] sm:$0xf]  ;;  %v1427_v51 = vor.u32 %v1754_v49, %v1426_v48  ;;  %v1770_v52 = vld [vmem:[#allocation8 + $0x184] sm:$0xf0] }
  0x40   :  { %712 = vmatpush.bf16.msra.mxu1 %v1403_v12  ;;  %v1435_v39 = vor.u32 %v1756_v37, %v1434_v18  ;;  %v1767_v53 = vld [vmem:[#allocation8 + $0x174] sm:$0xf]  ;;  %v1491_v54 = vor.u32 %v1770_v52, %v1490_v50  ;;  %v1484_v55 = vld [vmem:[#allocation8 + $0x178] sm:$0xf0]  ;;  %v1378_v60 = vld [vmem:[#allocation8 + $0xa0] sm:$0xf] }
  0x41   :  { %728 = vmatpush.bf16.msrb.mxu2 %v1451_v17  ;;  %v1783_v56 = vld [vmem:[#allocation8 + $0x1f4] sm:$0xf]  ;;  %v1548_v57 = vld [vmem:[#allocation8 + $0x1f8] sm:$0xf0]  ;;  %v1487_v58 = vor.u32 %v1767_v53, %v1484_v55  ;;  %v1742_v61 = vld [vmem:[#allocation8 + $0xa4] sm:$0xf0] }
  0x42   :  { %742 = vmatpush.bf16.msrb.mxu3 %v1515_v21  ;;  %v1551_v59 = vor.u32 %v1783_v56, %v1548_v57  ;;  %v1731_v62 = vld [vmem:[#allocation8 + $0x54] sm:$0xf]  ;;  %v1379_v63 = vor.u32 %v1742_v61, %v1378_v60  ;;  %v1340_v0 = vld [vmem:[#allocation8 + $0x58] sm:$0xf0]  ;;  %v1765_v2 = vld [vmem:[#allocation8 + $0x164] sm:$0xf] }
  0x43   :  { %701 = vmatpush.bf16.msra.mxu0 %v1315_v23  ;;  %v1343_v1 = vor.u32 %v1731_v62, %v1340_v0  ;;  %v1476_v3 = vld [vmem:[#allocation8 + $0x168] sm:$0xf0]  ;;  %v1781_v4 = vld [vmem:[#allocation8 + $0x1e4] sm:$0xf]  ;;  %v1370_v7 = vld [vmem:[#allocation8 + $0x90] sm:$0xf] }
  0x44   :  { %713 = vmatpush.bf16.msra.mxu1 %v1395_v22  ;;  %v1479_v5 = vor.u32 %v1765_v2, %v1476_v3  ;;  %v1540_v6 = vld [vmem:[#allocation8 + $0x1e8] sm:$0xf0]  ;;  %v1740_v8 = vld [vmem:[#allocation8 + $0x94] sm:$0xf0]  ;;  %v1729_v11 = vld [vmem:[#allocation8 + $0x44] sm:$0xf] }
  0x45   :  { %729 = vmatpush.bf16.msrb.mxu2 %v1443_v28  ;;  %v1543_v9 = vor.u32 %v1781_v4, %v1540_v6  ;;  %v1371_v10 = vor.u32 %v1740_v8, %v1370_v7  ;;  %v1332_v12 = vld [vmem:[#allocation8 + $0x48] sm:$0xf0]  ;;  %v1763_v14 = vld [vmem:[#allocation8 + $0x154] sm:$0xf]  ;;  %v1468_v15 = vld [vmem:[#allocation8 + $0x158] sm:$0xf0] }
  0x46   :  { %743 = vmatpush.bf16.msrb.mxu3 %v1507_v29  ;;  %v1335_v13 = vor.u32 %v1729_v11, %v1332_v12  ;;  %v1779_v16 = vld [vmem:[#allocation8 + $0x1d4] sm:$0xf]  ;;  %v1471_v17 = vor.u32 %v1763_v14, %v1468_v15  ;;  %v1532_v19 = vld [vmem:[#allocation8 + $0x1d8] sm:$0xf0]  ;;  %v1362_v20 = vld [vmem:[#allocation8 + $0x80] sm:$0xf] }
  0x47   :  { %702 = vmatpush.bf16.msra.mxu0 %v1307_v30  ;;  %v1738_v21 = vld [vmem:[#allocation8 + $0x84] sm:$0xf0]  ;;  %v1535_v22 = vor.u32 %v1779_v16, %v1532_v19  ;;  %v1727_v24 = vld [vmem:[#allocation8 + $0x34] sm:$0xf]  ;;  %v1324_v25 = vld [vmem:[#allocation8 + $0x38] sm:$0xf0] }
  0x48   :  { %714 = vmatpush.bf16.msra.mxu1 %v1387_v44  ;;  %v1363_v23 = vor.u32 %v1738_v21, %v1362_v20  ;;  %v1751_v26 = vld [vmem:[#allocation8 + $0xf4] sm:$0xf]  ;;  %v1327_v27 = vor.u32 %v1727_v24, %v1324_v25  ;;  %v1420_v28 = vld [vmem:[#allocation8 + $0xf8] sm:$0xf0]  ;;  %v1761_v30 = vld [vmem:[#allocation8 + $0x144] sm:$0xf] }
  0x49   :  { %730 = vmatpush.bf16.msrb.mxu2 %v1435_v39  ;;  %v1423_v29 = vor.u32 %v1751_v26, %v1420_v28  ;;  %v1460_v31 = vld [vmem:[#allocation8 + $0x148] sm:$0xf0]  ;;  %v1749_v37 = vld [vmem:[#allocation8 + $0xe4] sm:$0xf]  ;;  %v1452_v42 = vld [vmem:[#allocation8 + $0x138] sm:$0xf0] }
  0x4a   :  { %744 = vmatpush.bf16.msrb.mxu3 %v1499_v41  ;;  %v1463_v32 = vor.u32 %v1761_v30, %v1460_v31  ;;  %v1524_v34 = vld [vmem:[#allocation8 + $0x1c8] sm:$0xf0]  ;;  %v1759_v41 = vld [vmem:[#allocation8 + $0x134] sm:$0xf]  ;;  %v1516_v45 = vld [vmem:[#allocation8 + $0x1b8] sm:$0xf0] }
  0x4b   :  { %703 = vmatpush.bf16.msra.mxu0 %v1299_v33  ;;  %v1777_v33 = vld [vmem:[#allocation8 + $0x1c4] sm:$0xf]  ;;  %v1316_v18 = vld [vmem:[#allocation8 + $0x28] sm:$0xf0]  ;;  %v1775_v43 = vld [vmem:[#allocation8 + $0x1b4] sm:$0xf]  ;;  %v1455_v44 = vor.u32 %v1759_v41, %v1452_v42 }
  0x4c   :  { %715 = vmatpush.bf16.msra.mxu1 %v1379_v63  ;;  %v1527_v35 = vor.u32 %v1777_v33, %v1524_v34  ;;  %v1412_v39 = vld [vmem:[#allocation8 + $0xe8] sm:$0xf0]  ;;  %v1519_v46 = vor.u32 %v1775_v43, %v1516_v45  ;;  %v1308_v48 = vld [vmem:[#allocation8 + $0x18] sm:$0xf0]  ;;  %v1747_v49 = vld [vmem:[#allocation8 + $0xd4] sm:$0xf] }
  0x4d   :  { %731 = vmatpush.bf16.msrb.mxu2 %v1427_v51  ;;  %v1415_v40 = vor.u32 %v1749_v37, %v1412_v39  ;;  %v1404_v51 = vld [vmem:[#allocation8 + $0xd8] sm:$0xf0]  ;;  %v1757_v53 = vld [vmem:[#allocation8 + $0x124] sm:$0xf]  ;;  %v1508_v57 = vld [vmem:[#allocation8 + $0x1a8] sm:$0xf0] }
  0x4e   :  { %745 = vmatpush.bf16.msrb.mxu3 %v1491_v54  ;;  %v1407_v52 = vor.u32 %v1747_v49, %v1404_v51  ;;  %v1444_v54 = vld [vmem:[#allocation8 + $0x128] sm:$0xf0]  ;;  %v1773_v55 = vld [vmem:[#allocation8 + $0x1a4] sm:$0xf]  ;;  %v1436_v2 = vld [vmem:[#allocation8 + $0x118] sm:$0xf0] }
  0x4f   :  { %752 = vmatpush.bf16.msrb.mxu0 %v1359_v36  ;;  %v1725_v36 = vld [vmem:[#allocation8 + $0x24] sm:$0xf]  ;;  %v1447_v56 = vor.u32 %v1757_v53, %v1444_v54  ;;  %v1300_v60 = vld [vmem:[#allocation8 + $0x8] sm:$0xf0]  ;;  %v1771_v3 = vld [vmem:[#allocation8 + $0x194] sm:$0xf] }
  0x50   :  { %716 = vmatpush.bf16.msra.mxu1 %v1371_v10  ;;  %v1319_v38 = vor.u32 %v1725_v36, %v1316_v18  ;;  %v1745_v61 = vld [vmem:[#allocation8 + $0xc4] sm:$0xf]  ;;  %v1396_v63 = vld [vmem:[#allocation8 + $0xc8] sm:$0xf0]  ;;  %v179_v6 = vld [vmem:[#allocation7] sm:$0xf] }
  0x51   :  { %780 = vmatpush.bf16.msra.mxu2 %v1487_v58  ;;  %v1511_v58 = vor.u32 %v1773_v55, %v1508_v57  ;;  %v1399_v0 = vor.u32 %v1745_v61, %v1396_v63  ;;  %v1743_v8 = vld [vmem:[#allocation8 + $0xb4] sm:$0xf]  ;;  %v1753_v11 = vld [vmem:[#allocation8 + $0x104] sm:$0xf]  ;;  %v1428_v12 = vld [vmem:[#allocation8 + $0x108] sm:$0xf0] }
  0x52   :  { %794 = vmatpush.bf16.msra.mxu3 %v1551_v59  ;;  %v1721_v59 = vld [vmem:[#allocation8 + $0x4] sm:$0xf]  ;;  %v1431_v15 = vor.u32 %v1753_v11, %v1428_v12  ;;  %v1492_v16 = vld [vmem:[#allocation8 + $0x188] sm:$0xf0]  ;;  %v1372_v24 = vld [vmem:[#allocation8 + $0x98] sm:$0xf0] }
  0x53   :  { %753 = vmatpush.bf16.msrb.mxu0 %v1351_v47  ;;  %v1723_v47 = vld [vmem:[#allocation8 + $0x14] sm:$0xf]  ;;  %v1303_v62 = vor.u32 %v1721_v59, %v1300_v60  ;;  %v1380_v19 = vld [vmem:[#allocation8 + $0xa8] sm:$0xf0]  ;;  %v184_v31 = vperm.slane %v179_v6, 3  ;;  %v183_v34 = vperm.slane %v179_v6, 2 }
  0x54   :  { %717 = vmatpush.bf16.msra.mxu1 %v1363_v23  ;;  %v1311_v50 = vor.u32 %v1723_v47, %v1308_v48  ;;  %v1739_v23 = vld [vmem:[#allocation8 + $0x94] sm:$0xf]  ;;  %v1364_v30 = vld [vmem:[#allocation8 + $0x88] sm:$0xf0]  ;;  %v182_v49 = vperm.slane %v179_v6, 1  ;;  %v1789_v61 = vld [vmem:[#allocation10 + $0x20] sm:$0xff] }
  0x55   :  { %781 = vmatpush.bf16.msra.mxu2 %v1479_v5  ;;  %v1500_v5 = vld [vmem:[#allocation8 + $0x198] sm:$0xf0]  ;;  %v1375_v28 = vor.u32 %v1739_v23, %v1372_v24  ;;  %v1791_v59 = vld [vmem:[#allocation10 + $0x30] sm:$0xff]  ;;  %v1790_v60 = vld [vmem:[#allocation10 + $0x28] sm:$0xff]  ;;  %s1239_s1 = sshll.u32 %s2243_s13, 4  ;;  %s1240_s1 = int_to_ptr.hbm [resolvable:$true] %s1239_s1 }
  0x56   :  { %795 = vmatpush.bf16.msra.mxu3 %v1543_v9  ;;  %v1503_v7 = vor.u32 %v1771_v3, %v1500_v5  ;;  %v1388_v9 = vld [vmem:[#allocation8 + $0xb8] sm:$0xf0]  ;;  %v1798_v3 = vld [vmem:[#allocation10 + $0x68] sm:$0xff]  ;;  %v1797_v5 = vld [vmem:[#allocation10 + $0x60] sm:$0xff] }
  0x57   :  { %754 = vmatpush.bf16.msrb.mxu0 %v1343_v1  ;;  %v1755_v1 = vld [vmem:[#allocation8 + $0x114] sm:$0xf]  ;;  %v1391_v10 = vor.u32 %v1743_v8, %v1388_v9  ;;  %v1800_v63 = vld [vmem:[#allocation10 + $0x78] sm:$0xff] }
  0x58   :  { %766 = vmatpush.bf16.msrb.mxu1 %v1423_v29  ;;  %v1439_v4 = vor.u32 %v1755_v1, %v1436_v2  ;;  %v1737_v29 = vld [vmem:[#allocation8 + $0x84] sm:$0xf]  ;;  %v1799_v1 = vld [vmem:[#allocation10 + $0x70] sm:$0xff]  ;;  %v1786_v2 = vld [vmem:[#allocation10 + $0x8] sm:$0xff] }
  0x59   :  { %782 = vmatpush.bf16.msra.mxu2 %v1471_v17  ;;  %v1741_v17 = vld [vmem:[#allocation8 + $0xa4] sm:$0xf]  ;;  %v1795_v8 = vld [vmem:[#allocation10 + $0x50] sm:$0xff] }
  0x5a   :  { %796 = vmatpush.bf16.msra.mxu3 %v1535_v22  ;;  %v1383_v21 = vor.u32 %v1741_v17, %v1380_v19  ;;  %v181_v22 = vperm.slane %v179_v6, 0  ;;  %v1796_v6 = vld [vmem:[#allocation10 + $0x58] sm:$0xff]  ;;  %v370_v9 = vld [vmem:[%s2234_s4] sm:$0x3] }
  0x5b   :  { %755 = vmatpush.bf16.msrb.mxu0 %v1335_v13  ;;  %v1769_v13 = vld [vmem:[#allocation8 + $0x184] sm:$0xf]  ;;  %v372_v11 = vperm.slane %v370_v9, 0 }
  0x5c   :  { %767 = vmatpush.bf16.msrb.mxu1 %v1415_v40  ;;  %v1495_v20 = vor.u32 %v1769_v13, %v1492_v16 }
  0x5d   :  { %783 = vmatpush.bf16.msra.mxu2 %v1463_v32 }
  0x5e   :  { %797 = vmatpush.bf16.msra.mxu3 %v1527_v35  ;;  %v1367_v35 = vor.u32 %v1737_v29, %v1364_v30  ;;  %v373_v29 = vperm.slane %v370_v9, 1 }
  0x5f   :  { %756 = vmatpush.bf16.msrb.mxu0 %v1327_v27 }
  0x60   :  { %768 = vmatpush.bf16.msrb.mxu1 %v1407_v52 }
  0x61   :  { %784 = vmatpush.bf16.msra.mxu2 %v1455_v44 }
  0x62   :  { %798 = vmatpush.bf16.msra.mxu3 %v1519_v46 }
  0x63   :  { %757 = vmatpush.bf16.msrb.mxu0 %v1319_v38 }
  0x64   :  { %769 = vmatpush.bf16.msrb.mxu1 %v1399_v0  ;;  %v1787_v0 = vld [vmem:[#allocation10 + $0x10] sm:$0xff] }
  0x65   :  { %785 = vmatpush.bf16.msra.mxu2 %v1447_v56 }
  0x66   :  { %799 = vmatpush.bf16.msra.mxu3 %v1511_v58  ;;  %v1792_v58 = vld [vmem:[#allocation10 + $0x38] sm:$0xff] }
  0x67   :  { %758 = vmatpush.bf16.msrb.mxu0 %v1311_v50 }
  0x68   :  { %770 = vmatpush.bf16.msrb.mxu1 %v1391_v10  ;;  %v1794_v10 = vld [vmem:[#allocation10 + $0x48] sm:$0xff] }
  0x69   :  { %786 = vmatpush.bf16.msra.mxu2 %v1439_v4  ;;  %v1785_v4 = vld [vmem:[#allocation10] sm:$0xff] }
  0x6a   :  { %800 = vmatpush.bf16.msra.mxu3 %v1503_v7 }
  0x6b   :  { %759 = vmatpush.bf16.msrb.mxu0 %v1303_v62  ;;  %v1788_v62 = vld [vmem:[#allocation10 + $0x18] sm:$0xff] }
  0x6c   :  { %771 = vmatpush.bf16.msrb.mxu1 %v1383_v21 }
  0x6d   :  { %787 = vmatpush.bf16.msra.mxu2 %v1431_v15 }
  0x6e   :  { %801 = vmatpush.bf16.msra.mxu3 %v1495_v20 }
  0x70   :  { %772 = vmatpush.bf16.msrb.mxu1 %v1375_v28 }
  0x74   :  { %773 = vmatpush.bf16.msrb.mxu1 %v1367_v35 }
  0xac   :  { %v247_v14 = vpop.f32.mrf.mxu1 }
  0xad   :  { %v248_v25 = vadd.f32 %v247_v14, %v181_v22  ;;  %v1793_v14 = vld [vmem:[#allocation10 + $0x40] sm:$0xff] }
  0xaf   :  { %v294_v36 = vmax.f32 %v248_v25, 0.0 }
  0xb3   :  { %v275_v26 = vpop.f32.mrf.mxu2 }
  0xb4   :  { %v289_v27 = vpop.f32.mrf.mxu3  ;;  %v249_v32 = vpop.f32.mrf.mxu1  ;;  %v276_v39 = vadd.f32 %v275_v26, %v183_v34 }
  0xb5   :  { %v250_v33 = vadd.f32 %v249_v32, %v181_v22  ;;  %v290_v37 = vadd.f32 %v289_v27, %v184_v31 }
  0xb6   :  { %v296_v46 = vmax.f32 %v276_v39, 0.0 }
  0xb7   :  { %v298_v18 = vmax.f32 %v250_v33, 0.0  ;;  %v297_v42 = vmax.f32 %v290_v37, 0.0 }
  0xb9   :  { %v302_v38 = vpack.c.bf16 %v298_v18, %v294_v36 }
  0xbb   :  { %v277_v40 = vpop.f32.mrf.mxu2  ;;  %704 = vmatmul.bf16.vlgmr.msra.gmra.mxu0 %v302_v38 }
  0xbc   :  { %v291_v41 = vpop.f32.mrf.mxu3  ;;  %v278_v43 = vadd.f32 %v277_v40, %v183_v34  ;;  %v261_v45 = vpop.f32.mrf.mxu1  ;;  %946 = vmatpush.bf16.msra.mxu0 %v1792_v58  ;;  %v1801_v58 = vld [vmem:[#allocation11] sm:$0xff] }
  0xbd   :  { %v292_v44 = vadd.f32 %v291_v41, %v184_v31  ;;  %v262_v52 = vadd.f32 %v261_v45, %v182_v49 }
  0xbe   :  { %v300_v47 = vmax.f32 %v278_v43, 0.0 }
  0xbf   :  { %v301_v48 = vmax.f32 %v292_v44, 0.0  ;;  %v295_v55 = vmax.f32 %v262_v52, 0.0  ;;  %v1807_v52 = vld [vmem:[#allocation11 + $0x30] sm:$0xff] }
  0xc0   :  { %v304_v50 = vpack.c.bf16 %v300_v47, %v296_v46  ;;  %947 = vmatpush.bf16.msra.mxu0 %v1791_v59  ;;  %v1816_v59 = vld [vmem:[#allocation13 + $0x38] sm:$0xff] }
  0xc1   :  { %v305_v51 = vpack.c.bf16 %v301_v48, %v297_v42 }
  0xc2   :  { %732 = vmatmul.bf16.vlgmr.msrb.gmra.mxu2 %v304_v50 }
  0xc3   :  { %746 = vmatmul.bf16.vlgmr.msrb.gmra.mxu3 %v305_v51 }
  0xc4   :  { %v263_v53 = vpop.f32.mrf.mxu1  ;;  %948 = vmatpush.bf16.msra.mxu0 %v1790_v60  ;;  %1130 = vmatpush.bf16.msrb.mxu3 %v1816_v59  ;;  %v1815_v60 = vld [vmem:[#allocation13 + $0x30] sm:$0xff] }
  0xc5   :  { %v264_v54 = vadd.f32 %v263_v53, %v182_v49  ;;  %v1806_v53 = vld [vmem:[#allocation11 + $0x28] sm:$0xff] }
  0xc7   :  { %v299_v56 = vmax.f32 %v264_v54, 0.0  ;;  %v1805_v54 = vld [vmem:[#allocation11 + $0x20] sm:$0xff] }
  0xc8   :  { %949 = vmatpush.bf16.msra.mxu0 %v1789_v61  ;;  %1131 = vmatpush.bf16.msrb.mxu3 %v1815_v60  ;;  %v1814_v61 = vld [vmem:[#allocation13 + $0x28] sm:$0xff] }
  0xc9   :  { %v303_v57 = vpack.c.bf16 %v299_v56, %v295_v55  ;;  %v1804_v55 = vld [vmem:[#allocation11 + $0x18] sm:$0xff]  ;;  %v1803_v56 = vld [vmem:[#allocation11 + $0x10] sm:$0xff] }
  0xcb   :  { %718 = vmatmul.bf16.vlgmr.msra.gmra.mxu1 %v303_v57  ;;  %760 = vmatmul.bf16.vlgmr.msrb.gmra.mxu0 %v302_v38 }
  0xcc   :  { %950 = vmatpush.bf16.msra.mxu0 %v1788_v62  ;;  %960 = vmatpush.bf16.msra.mxu1 %v1800_v63  ;;  %v1813_v62 = vld [vmem:[#allocation13 + $0x20] sm:$0xff] }
  0xcd   :  { %1132 = vmatpush.bf16.msrb.mxu3 %v1814_v61 }
  0xd0   :  { %951 = vmatpush.bf16.msra.mxu0 %v1787_v0  ;;  %961 = vmatpush.bf16.msra.mxu1 %v1799_v1  ;;  %v1840_v1 = vld [vmem:[%s2236_s6] ss:$0 sm:$0xff] }
  0xd1   :  { %1133 = vmatpush.bf16.msrb.mxu3 %v1813_v62 }
  0xd2   :  { %788 = vmatmul.bf16.vlgmr.msra.gmra.mxu2 %v304_v50 }
  0xd3   :  { %802 = vmatmul.bf16.vlgmr.msra.gmra.mxu3 %v305_v51  ;;  %v1808_v51 = vld [vmem:[#allocation11 + $0x38] sm:$0xff] }
  0xd4   :  { %952 = vmatpush.bf16.msra.mxu0 %v1786_v2  ;;  %962 = vmatpush.bf16.msra.mxu1 %v1798_v3 }
  0xd5   :  { %1045 = vmatpush.bf16.msrb.mxu2 %v1808_v51 }
  0xd8   :  { %953 = vmatpush.bf16.msra.mxu0 %v1785_v4  ;;  %963 = vmatpush.bf16.msra.mxu1 %v1797_v5 }
  0xd9   :  { %1046 = vmatpush.bf16.msrb.mxu2 %v1807_v52 }
  0xdb   :  { %774 = vmatmul.bf16.vlgmr.msrb.gmra.mxu1 %v303_v57  ;;  %v1802_v57 = vld [vmem:[#allocation11 + $0x8] sm:$0xff] }
  0xdc   :  { %964 = vmatpush.bf16.msra.mxu1 %v1796_v6 }
  0xdd   :  { %1047 = vmatpush.bf16.msrb.mxu2 %v1806_v53 }
  0xe0   :  { %965 = vmatpush.bf16.msra.mxu1 %v1795_v8 }
  0xe1   :  { %1048 = vmatpush.bf16.msrb.mxu2 %v1805_v54 }
  0xe4   :  { %966 = vmatpush.bf16.msra.mxu1 %v1794_v10 }
  0xe5   :  { %1049 = vmatpush.bf16.msrb.mxu2 %v1804_v55 }
  0xe8   :  { %967 = vmatpush.bf16.msra.mxu1 %v1793_v14  ;;  %v1809_v14 = vld [vmem:[#allocation13] sm:$0xff] }
  0xe9   :  { %1050 = vmatpush.bf16.msrb.mxu2 %v1803_v56 }
  0xed   :  { %1051 = vmatpush.bf16.msrb.mxu2 %v1802_v57 }
  0xf1   :  { %1052 = vmatpush.bf16.msrb.mxu2 %v1801_v58 }
 0x138   :  { %v705_v7 = vpop.f32.mrf.mxu0 }
 0x139   :  { %v706_v17 = vadd.f32 %v705_v7, %v372_v11 }
 0x140   :  { %v707_v15 = vpop.f32.mrf.mxu0 }
 0x141   :  { %v708_v21 = vadd.f32 %v707_v15, %v372_v11  ;;  %v1812_v11 = vld [vmem:[#allocation13 + $0x18] sm:$0xff] }
 0x142   :  { %1134 = vmatpush.bf16.msrb.mxu3 %v1812_v11  ;;  %v1824_v15 = vld [vmem:[#allocation14 + $0x38] sm:$0xff] }
 0x143   :  { %1215 = vmatpush.bf16.msrb.mxu0 %v1824_v15 }
 0x145   :  { %v733_v12 = vpop.f32.mrf.mxu2 }
 0x146   :  { %v747_v13 = vpop.f32.mrf.mxu3 }
 0x148   :  { %v719_v16 = vpop.f32.mrf.mxu1  ;;  %v761_v26 = vpop.f32.mrf.mxu0 }
 0x149   :  { %v720_v19 = vadd.f32 %v719_v16, %v706_v17  ;;  %v762_v35 = vadd.f32 %v761_v26, %v373_v29  ;;  %v1823_v16 = vld [vmem:[#allocation14 + $0x30] sm:$0xff]  ;;  %v1822_v17 = vld [vmem:[#allocation14 + $0x28] sm:$0xff] }
 0x14a   :  { %1216 = vmatpush.bf16.msrb.mxu0 %v1823_v16 }
 0x14b   :  { %v734_v22 = vadd.f32 %v733_v12, %v720_v19  ;;  %v1811_v12 = vld [vmem:[#allocation13 + $0x10] sm:$0xff]  ;;  %v1821_v19 = vld [vmem:[#allocation14 + $0x20] sm:$0xff] }
 0x14c   :  { %1135 = vmatpush.bf16.msrb.mxu3 %v1811_v12 }
 0x14d   :  { %v735_v20 = vpop.f32.mrf.mxu2  ;;  %v748_v27 = vadd.f32 %v747_v13, %v734_v22  ;;  %v1810_v13 = vld [vmem:[#allocation13 + $0x8] sm:$0xff] }
 0x14e   :  { %v749_v23 = vpop.f32.mrf.mxu3  ;;  %1217 = vmatpush.bf16.msrb.mxu0 %v1822_v17 }
 0x14f   :  { %v808_v31 = vmax.f32 %v748_v27, 0.0 }
 0x150   :  { %v721_v24 = vpop.f32.mrf.mxu1  ;;  %v763_v38 = vpop.f32.mrf.mxu0  ;;  %1136 = vmatpush.bf16.msrb.mxu3 %v1810_v13 }
 0x151   :  { %v722_v25 = vadd.f32 %v721_v24, %v708_v21  ;;  %v764_v39 = vadd.f32 %v763_v38, %v373_v29  ;;  %v1841_v21 = vld [vmem:[%s2238_s8] ss:$0 sm:$0xff] }
 0x152   :  { %1218 = vmatpush.bf16.msrb.mxu0 %v1821_v19  ;;  %v1819_v29 = vld [vmem:[#allocation14 + $0x10] sm:$0xff] }
 0x153   :  { %v736_v28 = vadd.f32 %v735_v20, %v722_v25 }
 0x154   :  { %1137 = vmatpush.bf16.msrb.mxu3 %v1809_v14 }
 0x155   :  { %v750_v30 = vadd.f32 %v749_v23, %v736_v28  ;;  %v789_v33 = vpop.f32.mrf.mxu2  ;;  %v1820_v28 = vld [vmem:[#allocation14 + $0x18] sm:$0xff] }
 0x156   :  { %v803_v18 = vpop.f32.mrf.mxu3  ;;  %1219 = vmatpush.bf16.msrb.mxu0 %v1820_v28 }
 0x157   :  { %v810_v32 = vmax.f32 %v750_v30, 0.0  ;;  %v1818_v30 = vld [vmem:[#allocation14 + $0x8] sm:$0xff] }
 0x158   :  { %v775_v34 = vpop.f32.mrf.mxu1 }
 0x159   :  { %v812_v36 = vpack.c.bf16 %v810_v32, %v808_v31  ;;  %v776_v37 = vadd.f32 %v775_v34, %v762_v35  ;;  %v1817_v31 = vld [vmem:[#allocation14] sm:$0xff] }
 0x15a   :  { %1220 = vmatpush.bf16.msrb.mxu0 %v1819_v29 }
 0x15b   :  { %954 = vmatmul.bf16.vlgmr.msra.gmra.mxu0 %v812_v36  ;;  %v790_v40 = vadd.f32 %v789_v33, %v776_v37  ;;  %v1842_v33 = vld [vmem:[%s2240_s10] ss:$0 sm:$0xff] }
 0x15d   :  { %v791_v43 = vpop.f32.mrf.mxu2  ;;  %v804_v44 = vadd.f32 %v803_v18, %v790_v40 }
 0x15e   :  { %v805_v46 = vpop.f32.mrf.mxu3  ;;  %1221 = vmatpush.bf16.msrb.mxu0 %v1818_v30 }
 0x15f   :  { %v809_v48 = vmax.f32 %v804_v44, 0.0 }
 0x160   :  { %v777_v41 = vpop.f32.mrf.mxu1 }
 0x161   :  { %v778_v42 = vadd.f32 %v777_v41, %v764_v39  ;;  %v1843_v39 = vld [vmem:[%s2242_s12] ss:$0 sm:$0xff] }
 0x162   :  { %1222 = vmatpush.bf16.msrb.mxu0 %v1817_v31 }
 0x163   :  { %v792_v45 = vadd.f32 %v791_v43, %v778_v42 }
 0x165   :  { %v806_v47 = vadd.f32 %v805_v46, %v792_v45 }
 0x167   :  { %v811_v49 = vmax.f32 %v806_v47, 0.0 }
 0x169   :  { %v813_v50 = vpack.c.bf16 %v811_v49, %v809_v48 }
 0x16b   :  { %968 = vmatmul.bf16.vlgmr.msra.gmra.mxu1 %v813_v50 }
 0x1d8   :  { %v955_v63 = vpop.f32.mrf.mxu0 }
 0x1d9   :  { %v956_v3 = vadd.f32 %v1840_v1, %v955_v63 }
 0x1e0   :  { %v957_v2 = vpop.f32.mrf.mxu0 }
 0x1e1   :  { %v958_v4 = vadd.f32 %v1840_v1, %v957_v2 }
 0x1e8   :  { %v969_v0 = vpop.f32.mrf.mxu1 }
 0x1e9   :  { %v970_v5 = vadd.f32 %v969_v0, %v956_v3 }
 0x1eb   :  { %v974_v8 = vmax.f32 %v970_v5, 0.0 }
 0x1f0   :  { %v971_v6 = vpop.f32.mrf.mxu1 }
 0x1f1   :  { %v972_v7 = vadd.f32 %v971_v6, %v958_v4 }
 0x1f3   :  { %v975_v9 = vmax.f32 %v972_v7, 0.0 }
 0x1f5   :  { %v976_v10 = vpack.c.bf16 %v975_v9, %v974_v8 }
 0x1f7   :  { %1053 = vmatmul.bf16.vlgmr.msrb.gmra.mxu2 %v976_v10 }
 0x27a   :  { %v1054_v20 = vpop.f32.mrf.mxu2 }
 0x27b   :  { %v1055_v22 = vadd.f32 %v1841_v21, %v1054_v20 }
 0x27d   :  { %v1059_v25 = vmax.f32 %v1055_v22, 0.0 }
 0x282   :  { %v1056_v23 = vpop.f32.mrf.mxu2 }
 0x283   :  { %v1057_v24 = vadd.f32 %v1841_v21, %v1056_v23 }
 0x285   :  { %v1060_v26 = vmax.f32 %v1057_v24, 0.0 }
 0x287   :  { %v1061_v27 = vpack.c.bf16 %v1060_v26, %v1059_v25 }
 0x289   :  { %1138 = vmatmul.bf16.vlgmr.msrb.gmra.mxu3 %v1061_v27 }
 0x30c   :  { %v1139_v32 = vpop.f32.mrf.mxu3 }
 0x30d   :  { %v1140_v34 = vadd.f32 %v1842_v33, %v1139_v32 }
 0x30f   :  { %v1144_v18 = vmax.f32 %v1140_v34, 0.0 }
 0x314   :  { %v1141_v35 = vpop.f32.mrf.mxu3 }
 0x315   :  { %v1142_v36 = vadd.f32 %v1842_v33, %v1141_v35 }
 0x317   :  { %v1145_v37 = vmax.f32 %v1142_v36, 0.0 }
 0x319   :  { %v1146_v38 = vpack.c.bf16 %v1145_v37, %v1144_v18 }
 0x31b   :  { %1223 = vmatmul.bf16.vlgmr.msrb.gmra.mxu0 %v1146_v38 }
 0x398   :  { %v1224_v40 = vpop.f32.mrf.mxu0 }
 0x399   :  { %v1225_v41 = vadd.f32 %v1843_v39, %v1224_v40 }
 0x39b   :  { %v1229_v42 = vmax.f32 %v1225_v41, 0.0 }
 0x39d   :  { %1231 = vst [vmem:[#allocation16] sm:$0xff] %v1229_v42 }
 0x3a0   :  { %v1226_v43 = vpop.f32.mrf.mxu0 }
 0x3a1   :  { %v1227_v44 = vadd.f32 %v1843_v39, %v1226_v43 }
 0x3a3   :  { %v1230_v45 = vmax.f32 %v1227_v44, 0.0 }
 0x3a5   :  { %1232 = vst [vmem:[#allocation16 + $0x8] sm:$0xff] %v1230_v45 }
 0x3a6   :  { %1245 = dma.vmem_to_hbm [thread:$0]  %s1238_s18, 256, %s1240_s1, [#allocation4], %s2076_s20, %s2076_s20, %s2077_s21  }
 0x3a7   :  { %2070 = dma.done.wait [#allocation4], 256  }
 0x3a8   :  { %2071 = vsyncadd [#allocation4], 4294967040 }
 0x3a9   :  { %1250 = vsyncpa [#allocation3], 1 }
 0x3aa   :  { %1251 = vsyncpa [#allocation6], 1 }
 0x3ab   :  { %1252 = vsyncpa [#allocation9], 1 }
 0x3ac   :  { %1253 = vsyncpa [#allocation12], 1 }
 0x3ad   :  { %1254 = vsyncpa [#allocation15], 1 }
 0x3ae   :  { %1255 = vsyncpa [#allocation4], 1 }

</bundles_post_ra>
